<compile_context>
chip_gen: v7x
topology: tpu7x:2x2x1
jax: 0.10.0
libtpu: 0.0.40
codegen_flags: <defaults>
</compile_context>

<pallas_src>
import functools
import math

import jax
import jax.numpy as jnp
from jax.experimental import pallas as pl
from jax.experimental.pallas import tpu as pltpu

EPS = 1e-6          # RMSNormGeneral eps
SOFTCAP = 50.0      # attn_softclamp
FP16_MIN = -65504.0


# ---------------------------------------------------------------------------
# In-kernel helpers (traced inside Pallas kernel bodies)
# ---------------------------------------------------------------------------

def _quantize(y):
    """Per-token dynamic int8 quantization (awq invoke_quant semantics).
    Returns integer-valued f32 tile in [-128, 127] plus (T, 1) scale."""
    amax = jnp.max(jnp.abs(y), axis=-1, keepdims=True)
    scale = jnp.maximum(amax, 1e-8) * (1.0 / 127.0)
    # TODO(synk): jnp.round is round-half-to-even; the CUDA quant kernel rounds
    # half away from zero (off-by-one LSB on exact .5 boundaries).
    q = jnp.clip(jnp.round(y / scale), -128.0, 127.0)
    return q, scale


def _w8a8_matmul(qact, wq_i8, mxu):
    """int8-activation x int8-weight matmul, RHS laid out (K, N).
    mxu='int8': native int8 MXU with exact int32 accumulation (v5e/v6e).
    mxu='bf16': bf16 operands (exact for int8 values), f32 MXU accumulation (v7x).
    mxu='f32' : conservative fallback."""
    dn = (((1,), (0,)), ((), ()))
    if mxu == "int8":
        acc = jax.lax.dot_general(qact.astype(jnp.int8), wq_i8, dn,
                                  preferred_element_type=jnp.int32)
        return acc.astype(jnp.float32)
    if mxu == "bf16":
        return jax.lax.dot_general(qact.astype(jnp.bfloat16),
                                   wq_i8.astype(jnp.bfloat16), dn,
                                   preferred_element_type=jnp.float32)
    return jax.lax.dot_general(qact, wq_i8.astype(jnp.float32), dn,
                               preferred_element_type=jnp.float32)


def _rmsnorm(x, w):
    var = jnp.mean(x * x, axis=-1, keepdims=True)
    return x * jax.lax.rsqrt(var + EPS) * w


# ---------------------------------------------------------------------------
# Kernels
# ---------------------------------------------------------------------------

def _ln_qkv_kernel(x_ref, w_ref, wq_ref, ws_ref, q_ref, k_ref, v_ref,
                   *, q_dim, kv_dim, mxu):
    """input_layernorm (RMSNormGeneral + per-token quant) fused with the W8A8
    fused-QKV projection; writes q/k/v directly as separate outputs."""
    y = _rmsnorm(x_ref[...], w_ref[...])
    qa, sa = _quantize(y)
    out = _w8a8_matmul(qa, wq_ref[...], mxu) * sa * ws_ref[...]    # (T, Nqkv)
    q_ref[...] = out[:, :q_dim]
    k_ref[...] = out[:, q_dim:q_dim + kv_dim]
    v_ref[...] = out[:, q_dim + kv_dim:q_dim + 2 * kv_dim]


def _attn_kernel(q_ref, k_ref, v_ref, m_ref, o_ref, *, scale):
    """Non-causal attention with softcap and key masking for one (batch, head).
    PyTorch sets masked K rows to -inf; equivalent here: mask the scores so the
    masked keys get zero probability."""
    q = q_ref[0, 0]                                               # (S, D)
    k = k_ref[0, 0]                                               # (S, D)
    v = v_ref[0, 0]                                               # (S, D)
    s = jax.lax.dot_general(q, k, (((1,), (1,)), ((), ())),
                            preferred_element_type=jnp.float32) * scale
    s = SOFTCAP * jnp.tanh(s * (1.0 / SOFTCAP))
    s = s + jnp.where(m_ref[...] <= FP16_MIN, -1e30, 0.0)         # (1, S) key mask
    s = s - jnp.max(s, axis=-1, keepdims=True)
    p = jnp.exp(s)
    p = p / jnp.sum(p, axis=-1, keepdims=True)
    o_ref[0, 0] = jnp.dot(p, v, preferred_element_type=jnp.float32)


def _quant_oproj_res_kernel(a_ref, r_ref, wq_ref, ws_ref, o_ref, *, mxu):
    """invoke_quant + W8A8 out_proj + residual add, all fused."""
    qa, sa = _quantize(a_ref[...])
    out = _w8a8_matmul(qa, wq_ref[...], mxu) * sa * ws_ref[...]
    o_ref[...] = r_ref[...] + out


def _mlp_res_kernel(x_ref, w_ref, gu_wq_ref, gu_ws_ref, dn_wq_ref, dn_ws_ref,
                    o_ref, *, inter, mxu):
    """post_attention_layernorm + quant + W8A8 gate/up + gelu_and_mul_quant +
    W8A8 down_proj + residual add in a single kernel (nothing hits HBM)."""
    x = x_ref[...]
    y = _rmsnorm(x, w_ref[...])
    qa, sa = _quantize(y)
    gu = _w8a8_matmul(qa, gu_wq_ref[...], mxu) * sa * gu_ws_ref[...]   # (T, 2I)
    act = jax.nn.gelu(gu[:, :inter], approximate=True) * gu[:, inter:]
    qm, sm = _quantize(act)
    out = _w8a8_matmul(qm, dn_wq_ref[...], mxu) * sm * dn_ws_ref[...]
    o_ref[...] = x + out


# ---------------------------------------------------------------------------
# pallas_call wrappers
# ---------------------------------------------------------------------------

def _token_tile(T):
    """Token (sublane) tile for the token-wise kernels. One block at toy
    sizes; 128-row tiles at scale (parallel axis -> fills both v7x TCs)."""
    if T <= 128:
        return T
    for cand in (128, 64, 32, 16, 8):
        if T % cand == 0:
            return cand
    return T


_TOKEN_PARALLEL = pltpu.CompilerParams(dimension_semantics=("parallel",))


def ln_qkv(x, ln_w, wq, ws, q_dim, kv_dim, mxu):
    T, E = x.shape
    Nq = wq.shape[1]
    tt = _token_tile(T)
    kernel = functools.partial(_ln_qkv_kernel, q_dim=q_dim, kv_dim=kv_dim, mxu=mxu)
    return pl.pallas_call(
        kernel,
        grid=(T // tt,),
        in_specs=[pl.BlockSpec((tt, E), lambda i: (i, 0)),
                  pl.BlockSpec((1, E), lambda i: (0, 0)),
                  pl.BlockSpec((E, Nq), lambda i: (0, 0)),
                  pl.BlockSpec((1, Nq), lambda i: (0, 0))],
        out_specs=[pl.BlockSpec((tt, q_dim), lambda i: (i, 0)),
                   pl.BlockSpec((tt, kv_dim), lambda i: (i, 0)),
                   pl.BlockSpec((tt, kv_dim), lambda i: (i, 0))],
        out_shape=[jax.ShapeDtypeStruct((T, q_dim), jnp.float32),
                   jax.ShapeDtypeStruct((T, kv_dim), jnp.float32),
                   jax.ShapeDtypeStruct((T, kv_dim), jnp.float32)],
        compiler_params=_TOKEN_PARALLEL,
    )(x, ln_w.reshape(1, E), wq, ws)


def attention(q, k, v, mask_row, *, head_dim, groups):
    B, H, S, D = q.shape
    kernel = functools.partial(_attn_kernel, scale=1.0 / math.sqrt(head_dim))
    return pl.pallas_call(
        kernel,
        grid=(B, H),
        in_specs=[pl.BlockSpec((1, 1, S, D), lambda b, h: (b, h, 0, 0)),
                  # shared KV head via index_map -> no jnp.repeat / no extra DMA
                  pl.BlockSpec((1, 1, S, D), lambda b, h: (b, h // groups, 0, 0)),
                  pl.BlockSpec((1, 1, S, D), lambda b, h: (b, h // groups, 0, 0)),
                  pl.BlockSpec((1, S), lambda b, h: (0, 0))],
        out_specs=pl.BlockSpec((1, 1, S, D), lambda b, h: (b, h, 0, 0)),
        out_shape=jax.ShapeDtypeStruct((B, H, S, D), jnp.float32),
        compiler_params=pltpu.CompilerParams(
            dimension_semantics=("parallel", "arbitrary")),
    )(q, k, v, mask_row)


def quant_oproj_residual(attn, residual, wq, ws, mxu):
    T, K = attn.shape
    E = wq.shape[1]
    tt = _token_tile(T)
    kernel = functools.partial(_quant_oproj_res_kernel, mxu=mxu)
    return pl.pallas_call(
        kernel,
        grid=(T // tt,),
        in_specs=[pl.BlockSpec((tt, K), lambda i: (i, 0)),
                  pl.BlockSpec((tt, E), lambda i: (i, 0)),
                  pl.BlockSpec((K, E), lambda i: (0, 0)),
                  pl.BlockSpec((1, E), lambda i: (0, 0))],
        out_specs=pl.BlockSpec((tt, E), lambda i: (i, 0)),
        out_shape=jax.ShapeDtypeStruct((T, E), jnp.float32),
        compiler_params=_TOKEN_PARALLEL,
    )(attn, residual, wq, ws)


def mlp_residual(x, ln_w, gu_wq, gu_ws, dn_wq, dn_ws, inter, mxu):
    T, E = x.shape
    two_i = gu_wq.shape[1]
    tt = _token_tile(T)
    kernel = functools.partial(_mlp_res_kernel, inter=inter, mxu=mxu)
    return pl.pallas_call(
        kernel,
        grid=(T // tt,),
        in_specs=[pl.BlockSpec((tt, E), lambda i: (i, 0)),
                  pl.BlockSpec((1, E), lambda i: (0, 0)),
                  pl.BlockSpec((E, two_i), lambda i: (0, 0)),
                  pl.BlockSpec((1, two_i), lambda i: (0, 0)),
                  pl.BlockSpec((inter, E), lambda i: (0, 0)),
                  pl.BlockSpec((1, E), lambda i: (0, 0))],
        out_specs=pl.BlockSpec((tt, E), lambda i: (i, 0)),
        out_shape=jax.ShapeDtypeStruct((T, E), jnp.float32),
        compiler_params=_TOKEN_PARALLEL,
    )(x, ln_w.reshape(1, E), gu_wq, gu_ws, dn_wq, dn_ws)


# ---------------------------------------------------------------------------
# Encoder layer forward (glue in plain JAX)
# ---------------------------------------------------------------------------

def quant_mixture_encoder_layer(hidden_states, params, attention_mask,
                                bsz, seqlen, mxu):
    E = params["embed_dim"]
    H, KVH, D = params["num_heads"], params["num_kv_heads"], params["head_dim"]
    groups = H // KVH
    q_dim = H * D
    inter = params["intermediate_size"]

    x = hidden_states.reshape(-1, E)
    residual = x

    # --- fused: input_layernorm + per-token quant + W8A8 qkv_proj ---
    q, k, v = ln_qkv(x, params["ln1_w"], params["qkv_wq"], params["qkv_ws"],
                     q_dim, KVH * D, mxu)

    # TODO(synk): RoPE (fused_rope_with_pos_forward_func) and kv-cache concat
    # not implemented; this reproduces the freqs=None / kv_cache=None path.
    # At production head_dim (multiple of 128 lanes) these transposes are
    # replaced by BlockSpec head-slicing over the (T, H*D) layout.
    q = q.reshape(bsz, seqlen, H, D).transpose(0, 2, 1, 3)       # (B, H, S, D)
    k = k.reshape(bsz, seqlen, KVH, D).transpose(0, 2, 1, 3)     # (B, KVH, S, D)
    v = v.reshape(bsz, seqlen, KVH, D).transpose(0, 2, 1, 3)

    # Reference flash_attention masks keys with mask[0,0,0] shared across batch.
    mask_row = attention_mask[0, 0]                              # (1, S)
    attn = attention(q, k, v, mask_row, head_dim=D, groups=groups)
    attn = attn.transpose(0, 2, 1, 3).reshape(-1, q_dim)

    # --- fused: invoke_quant + W8A8 out_proj + residual add ---
    x = quant_oproj_residual(attn, residual, params["o_wq"], params["o_ws"], mxu)

    # --- fused: post_attention_layernorm + quant + gate/up + gelu_and_mul_quant
    #            + down_proj + residual add ---
    x = mlp_residual(x, params["ln2_w"], params["gateup_wq"], params["gateup_ws"],
                     params["down_wq"], params["down_ws"], inter, mxu)
    return x


# ---------------------------------------------------------------------------
# MXU path selection (int8 MXU on v5e/v6e, bf16 on v7x / everything else)
# ---------------------------------------------------------------------------

def select_mxu_mode():
    kind = ""
    try:
        kind = jax.devices()[0].device_kind.lower()
    except Exception:
        pass
    if not (("v5" in kind) or ("v6" in kind)):
        return "bf16"                       # v7x MXU has no int path
    try:                                    # probe Mosaic int8 matmul lowering
        def _probe(a_ref, b_ref, o_ref):
            o_ref[...] = jax.lax.dot_general(
                a_ref[...], b_ref[...], (((1,), (0,)), ((), ())),
                preferred_element_type=jnp.int32)
        a = jnp.ones((16, 32), jnp.int8)
        b = jnp.ones((32, 64), jnp.int8)
        jax.block_until_ready(pl.pallas_call(
            _probe, out_shape=jax.ShapeDtypeStruct((16, 64), jnp.int32))(a, b))
        return "int8"
    except Exception:
        return "bf16"


# ---------------------------------------------------------------------------
# Deterministic parameter init (synthetic; mimics W8A8 per-channel quant)
# ---------------------------------------------------------------------------

def _quantize_weight(w):
    """w: (out_features, in_features) like torch Linear. Per-out-channel int8.
    Stored transposed (K, N) so the matmul RHS contracts dim 0 (no XLU pass)."""
    ws = jnp.maximum(jnp.max(jnp.abs(w), axis=1, keepdims=True), 1e-8) / 127.0
    wq = jnp.clip(jnp.round(w / ws), -128, 127).astype(jnp.int8)
    # NOTE: jnp has no ascontiguousarray; jnp.asarray of the transpose is enough
    # (arrays are dense; the (K, N) logical layout is what matters to Mosaic).
    return jnp.asarray(wq.T), ws.reshape(1, -1).astype(jnp.float32)


def make_params(key, E, H, KVH, D, inter):
    q_dim, kv_dim = H * D, KVH * D
    ks = jax.random.split(key, 8)
    std = 0.05
    qkv_w = jax.random.normal(ks[0], (q_dim + 2 * kv_dim, E), jnp.float32) * std
    o_w = jax.random.normal(ks[1], (E, q_dim), jnp.float32) * std
    gateup_w = jax.random.normal(ks[2], (2 * inter, E), jnp.float32) * std
    down_w = jax.random.normal(ks[3], (E, inter), jnp.float32) * std
    qkv_wq, qkv_ws = _quantize_weight(qkv_w)          # (E, q_dim+2*kv_dim)
    o_wq, o_ws = _quantize_weight(o_w)                # (q_dim, E)
    gateup_wq, gateup_ws = _quantize_weight(gateup_w)  # (E, 2*inter)
    down_wq, down_ws = _quantize_weight(down_w)        # (inter, E)
    # Gemma-style RMSNorm weight (stored weight + 1)
    ln1_w = 1.0 + 0.1 * jax.random.normal(ks[4], (E,), jnp.float32)
    ln2_w = 1.0 + 0.1 * jax.random.normal(ks[5], (E,), jnp.float32)
    return dict(
        embed_dim=E, num_heads=H, num_kv_heads=KVH, head_dim=D,
        intermediate_size=inter,
        qkv_wq=qkv_wq, qkv_ws=qkv_ws,
        o_wq=o_wq, o_ws=o_ws,
        gateup_wq=gateup_wq, gateup_ws=gateup_ws,
        down_wq=down_wq, down_ws=down_ws,
        ln1_w=ln1_w, ln2_w=ln2_w,
    )


if __name__ == "__main__":
    B, S, E = 2, 8, 32
    H, KVH, D = 4, 2, 8
    INTER = 64

    key = jax.random.PRNGKey(0)
    k_x, k_p = jax.random.split(key)
    hidden_states = jax.random.normal(k_x, (B, S, E), jnp.float32)
    params = make_params(k_p, E, H, KVH, D, INTER)

    # attention mask: (1, 1, 1, S); last two key positions masked with fp16 min
    attention_mask = jnp.zeros((1, 1, 1, S), jnp.float32).at[..., -2:].set(FP16_MIN)

    preferred = select_mxu_mode()
    modes = [preferred] + [m for m in ("bf16", "f32") if m != preferred]
    out, last_err = None, None
    for mode in modes:                      # graceful per-chip MXU-path fallback
        try:
            out = quant_mixture_encoder_layer(hidden_states, params,
                                              attention_mask, B, S, mode)
            out = jax.block_until_ready(out)
            break
        except Exception as e:              # noqa: BLE001 - fall back to next mode
            out, last_err = None, e
    if out is None:
        raise last_err

    assert out.shape == (B * S, E), out.shape
    assert bool(jnp.all(jnp.isfinite(out)))
    print("KERNEL_OK")
</pallas_src>

<mosaic_0001>
module attributes {stable_mosaic.version = 11 : i64} {
  func.func @_ln_qkv_kernel(%arg0: i32, %arg1: memref<16x32xf32, #tpu.memory_space<vmem>>, %arg2: memref<1x32xf32, #tpu.memory_space<vmem>>, %arg3: memref<32x64xi8, #tpu.memory_space<vmem>>, %arg4: memref<1x64xf32, #tpu.memory_space<vmem>>, %arg5: memref<16x32xf32, #tpu.memory_space<vmem>>, %arg6: memref<16x16xf32, #tpu.memory_space<vmem>>, %arg7: memref<16x16xf32, #tpu.memory_space<vmem>>) attributes {dimension_semantics = [#tpu.dimension_semantics<parallel>], iteration_bounds = array<i64: 1>, scalar_prefetch = 0 : i64, scratch_operands = 0 : i64, tpu.core_type = #tpu.core_type<tc>, window_params = [{transform_indices = @transform_0, window_bounds = array<i64: 16, 32>}, {pipeline_mode = #tpu.pipeline_mode<synchronous>, transform_indices = @transform_1, window_bounds = array<i64: 1, 32>}, {pipeline_mode = #tpu.pipeline_mode<synchronous>, transform_indices = @transform_2, window_bounds = array<i64: 32, 64>}, {pipeline_mode = #tpu.pipeline_mode<synchronous>, transform_indices = @transform_3, window_bounds = array<i64: 1, 64>}, {transform_indices = @transform_4, window_bounds = array<i64: 16, 32>}, {transform_indices = @transform_5, window_bounds = array<i64: 16, 16>}, {transform_indices = @transform_6, window_bounds = array<i64: 16, 16>}]} {
    %c0 = arith.constant 0 : index
    %c0_0 = arith.constant 0 : index
    %0 = vector.load %arg1[%c0, %c0_0] : memref<16x32xf32, #tpu.memory_space<vmem>>, vector<16x32xf32>
    %c0_1 = arith.constant 0 : index
    %c0_2 = arith.constant 0 : index
    %1 = vector.load %arg2[%c0_1, %c0_2] : memref<1x32xf32, #tpu.memory_space<vmem>>, vector<1x32xf32>
    %2 = arith.mulf %0, %0 : vector<16x32xf32>
    %cst = arith.constant dense<0.000000e+00> : vector<16xf32>
    %3 = vector.multi_reduction <add>, %2, %cst [1] : vector<16x32xf32> to vector<16xf32>
    %4 = vector.shape_cast %3 : vector<16xf32> to vector<16x1xf32>
    %cst_3 = arith.constant 3.200000e+01 : f32
    %5 = vector.broadcast %cst_3 : f32 to vector<16x1xf32>
    %6 = arith.divf %4, %5 : vector<16x1xf32>
    %cst_4 = arith.constant 9.99999997E-7 : f32
    %7 = vector.broadcast %cst_4 : f32 to vector<16x1xf32>
    %8 = arith.addf %6, %7 : vector<16x1xf32>
    %9 = math.rsqrt %8 : vector<16x1xf32>
    %10 = vector.broadcast %9 : vector<16x1xf32> to vector<16x32xf32>
    %11 = arith.mulf %0, %10 : vector<16x32xf32>
    %12 = vector.broadcast %1 : vector<1x32xf32> to vector<16x32xf32>
    %13 = arith.mulf %11, %12 : vector<16x32xf32>
    %14 = math.absf %13 : vector<16x32xf32>
    %cst_5 = arith.constant dense<0xFF800000> : vector<16xf32>
    %15 = vector.multi_reduction <maximumf>, %14, %cst_5 [1] : vector<16x32xf32> to vector<16xf32>
    %16 = vector.shape_cast %15 : vector<16xf32> to vector<16x1xf32>
    %cst_6 = arith.constant 9.99999993E-9 : f32
    %17 = vector.broadcast %cst_6 : f32 to vector<16x1xf32>
    %18 = arith.maximumf %16, %17 : vector<16x1xf32>
    %cst_7 = arith.constant 0.00787401571 : f32
    %19 = vector.broadcast %cst_7 : f32 to vector<16x1xf32>
    %20 = arith.mulf %18, %19 : vector<16x1xf32>
    %21 = vector.broadcast %20 : vector<16x1xf32> to vector<16x32xf32>
    %22 = arith.divf %13, %21 : vector<16x32xf32>
    %23 = math.roundeven %22 : vector<16x32xf32>
    %cst_8 = arith.constant -1.280000e+02 : f32
    %cst_9 = arith.constant 1.270000e+02 : f32
    %24 = vector.broadcast %cst_8 : f32 to vector<16x32xf32>
    %25 = arith.maximumf %24, %23 : vector<16x32xf32>
    %26 = vector.broadcast %cst_9 : f32 to vector<16x32xf32>
    %27 = arith.minimumf %26, %25 : vector<16x32xf32>
    %c0_10 = arith.constant 0 : index
    %c0_11 = arith.constant 0 : index
    %28 = vector.load %arg3[%c0_10, %c0_11] : memref<32x64xi8, #tpu.memory_space<vmem>>, vector<32x64xi8>
    %29 = arith.truncf %27 : vector<16x32xf32> to vector<16x32xbf16>
    %30 = arith.sitofp %28 : vector<32x64xi8> to vector<32x64xbf16>
    %cst_12 = arith.constant dense<0.000000e+00> : vector<16x64xf32>
    %31 = tpu.matmul %29, %30, %cst_12 {dimension_numbers = #tpu.dot_dimension_numbers<[1], [0], [0], [1], [0, 0, 1, 1], [], []>} : vector<16x32xbf16>, vector<32x64xbf16>, vector<16x64xf32> -> vector<16x64xf32>
    %32 = vector.broadcast %20 : vector<16x1xf32> to vector<16x64xf32>
    %33 = arith.mulf %31, %32 : vector<16x64xf32>
    %c0_13 = arith.constant 0 : index
    %c0_14 = arith.constant 0 : index
    %34 = vector.load %arg4[%c0_13, %c0_14] : memref<1x64xf32, #tpu.memory_space<vmem>>, vector<1x64xf32>
    %35 = vector.broadcast %34 : vector<1x64xf32> to vector<16x64xf32>
    %36 = arith.mulf %33, %35 : vector<16x64xf32>
    %37 = vector.extract_strided_slice %36 {offsets = [0, 0], sizes = [16, 32], strides = [1, 1]} : vector<16x64xf32> to vector<16x32xf32>
    %c0_15 = arith.constant 0 : index
    %c0_16 = arith.constant 0 : index
    %38 = vector.load %arg5[%c0_15, %c0_16] : memref<16x32xf32, #tpu.memory_space<vmem>>, vector<16x32xf32>
    tpu.vector_store %arg5[%c0_15, %c0_16], %37 {strides = array<i32>} : memref<16x32xf32, #tpu.memory_space<vmem>>, vector<16x32xf32>,
    %39 = vector.extract_strided_slice %36 {offsets = [0, 32], sizes = [16, 16], strides = [1, 1]} : vector<16x64xf32> to vector<16x16xf32>
    %c0_17 = arith.constant 0 : index
    %c0_18 = arith.constant 0 : index
    %40 = vector.load %arg6[%c0_17, %c0_18] : memref<16x16xf32, #tpu.memory_space<vmem>>, vector<16x16xf32>
    tpu.vector_store %arg6[%c0_17, %c0_18], %39 {strides = array<i32>} : memref<16x16xf32, #tpu.memory_space<vmem>>, vector<16x16xf32>,
    %41 = vector.extract_strided_slice %36 {offsets = [0, 48], sizes = [16, 16], strides = [1, 1]} : vector<16x64xf32> to vector<16x16xf32>
    %c0_19 = arith.constant 0 : index
    %c0_20 = arith.constant 0 : index
    %42 = vector.load %arg7[%c0_19, %c0_20] : memref<16x16xf32, #tpu.memory_space<vmem>>, vector<16x16xf32>
    tpu.vector_store %arg7[%c0_19, %c0_20], %41 {strides = array<i32>} : memref<16x16xf32, #tpu.memory_space<vmem>>, vector<16x16xf32>,
    return
  }
  func.func @transform_0(%arg0: i32) -> (i32, i32) {
    %c0_i32 = arith.constant 0 : i32
    %c0_i32_0 = arith.constant 0 : i32
    return %arg0, %c0_i32 : i32, i32
  }
  func.func @transform_1(%arg0: i32) -> (i32, i32) {
    %c0_i32 = arith.constant 0 : i32
    %c0_i32_0 = arith.constant 0 : i32
    %c0_i32_1 = arith.constant 0 : i32
    return %c0_i32, %c0_i32_0 : i32, i32
  }
  func.func @transform_2(%arg0: i32) -> (i32, i32) {
    %c0_i32 = arith.constant 0 : i32
    %c0_i32_0 = arith.constant 0 : i32
    %c0_i32_1 = arith.constant 0 : i32
    return %c0_i32, %c0_i32_0 : i32, i32
  }
  func.func @transform_3(%arg0: i32) -> (i32, i32) {
    %c0_i32 = arith.constant 0 : i32
    %c0_i32_0 = arith.constant 0 : i32
    %c0_i32_1 = arith.constant 0 : i32
    return %c0_i32, %c0_i32_0 : i32, i32
  }
  func.func @transform_4(%arg0: i32) -> (i32, i32) {
    %c0_i32 = arith.constant 0 : i32
    %c0_i32_0 = arith.constant 0 : i32
    return %arg0, %c0_i32 : i32, i32
  }
  func.func @transform_5(%arg0: i32) -> (i32, i32) {
    %c0_i32 = arith.constant 0 : i32
    %c0_i32_0 = arith.constant 0 : i32
    return %arg0, %c0_i32 : i32, i32
  }
  func.func @transform_6(%arg0: i32) -> (i32, i32) {
    %c0_i32 = arith.constant 0 : i32
    %c0_i32_0 = arith.constant 0 : i32
    return %arg0, %c0_i32 : i32, i32
  }
}

module attributes {stable_mosaic.version = 11 : i64} {
  func.func @_ln_qkv_kernel(%arg0: i32, %arg1: memref<16x32xf32, #tpu.memory_space<vmem>>, %arg2: memref<1x32xf32, #tpu.memory_space<vmem>>, %arg3: memref<32x64xi8, #tpu.memory_space<vmem>>, %arg4: memref<1x64xf32, #tpu.memory_space<vmem>>, %arg5: memref<16x32xf32, #tpu.memory_space<vmem>>, %arg6: memref<16x16xf32, #tpu.memory_space<vmem>>, %arg7: memref<16x16xf32, #tpu.memory_space<vmem>>) attributes {dimension_semantics = [#tpu.dimension_semantics<parallel>], iteration_bounds = array<i64: 1>, scalar_prefetch = 0 : i64, scratch_operands = 0 : i64, tpu.core_type = #tpu.core_type<tc>, window_params = [{transform_indices = @transform_0, window_bounds = array<i64: 16, 32>}, {pipeline_mode = #tpu.pipeline_mode<synchronous>, transform_indices = @transform_1, window_bounds = array<i64: 1, 32>}, {pipeline_mode = #tpu.pipeline_mode<synchronous>, transform_indices = @transform_2, window_bounds = array<i64: 32, 64>}, {pipeline_mode = #tpu.pipeline_mode<synchronous>, transform_indices = @transform_3, window_bounds = array<i64: 1, 64>}, {transform_indices = @transform_4, window_bounds = array<i64: 16, 32>}, {transform_indices = @transform_5, window_bounds = array<i64: 16, 16>}, {transform_indices = @transform_6, window_bounds = array<i64: 16, 16>}]} {
    %c0 = arith.constant 0 : index
    %c0_0 = arith.constant 0 : index
    %0 = vector.load %arg1[%c0, %c0_0] : memref<16x32xf32, #tpu.memory_space<vmem>>, vector<16x32xf32>
    %c0_1 = arith.constant 0 : index
    %c0_2 = arith.constant 0 : index
    %1 = vector.load %arg2[%c0_1, %c0_2] : memref<1x32xf32, #tpu.memory_space<vmem>>, vector<1x32xf32>
    %2 = arith.mulf %0, %0 : vector<16x32xf32>
    %cst = arith.constant dense<0.000000e+00> : vector<16xf32>
    %3 = vector.multi_reduction <add>, %2, %cst [1] : vector<16x32xf32> to vector<16xf32>
    %4 = vector.shape_cast %3 : vector<16xf32> to vector<16x1xf32>
    %cst_3 = arith.constant 3.200000e+01 : f32
    %5 = vector.broadcast %cst_3 : f32 to vector<16x1xf32>
    %6 = arith.divf %4, %5 : vector<16x1xf32>
    %cst_4 = arith.constant 9.99999997E-7 : f32
    %7 = vector.broadcast %cst_4 : f32 to vector<16x1xf32>
    %8 = arith.addf %6, %7 : vector<16x1xf32>
    %9 = math.rsqrt %8 : vector<16x1xf32>
    %10 = vector.broadcast %9 : vector<16x1xf32> to vector<16x32xf32>
    %11 = arith.mulf %0, %10 : vector<16x32xf32>
    %12 = vector.broadcast %1 : vector<1x32xf32> to vector<16x32xf32>
    %13 = arith.mulf %11, %12 : vector<16x32xf32>
    %14 = math.absf %13 : vector<16x32xf32>
    %cst_5 = arith.constant dense<0xFF800000> : vector<16xf32>
    %15 = vector.multi_reduction <maximumf>, %14, %cst_5 [1] : vector<16x32xf32> to vector<16xf32>
    %16 = vector.shape_cast %15 : vector<16xf32> to vector<16x1xf32>
    %cst_6 = arith.constant 9.99999993E-9 : f32
    %17 = vector.broadcast %cst_6 : f32 to vector<16x1xf32>
    %18 = arith.maximumf %16, %17 : vector<16x1xf32>
    %cst_7 = arith.constant 0.00787401571 : f32
    %19 = vector.broadcast %cst_7 : f32 to vector<16x1xf32>
    %20 = arith.mulf %18, %19 : vector<16x1xf32>
    %21 = vector.broadcast %20 : vector<16x1xf32> to vector<16x32xf32>
    %22 = arith.divf %13, %21 : vector<16x32xf32>
    %23 = math.roundeven %22 : vector<16x32xf32>
    %cst_8 = arith.constant -1.280000e+02 : f32
    %cst_9 = arith.constant 1.270000e+02 : f32
    %24 = vector.broadcast %cst_8 : f32 to vector<16x32xf32>
    %25 = arith.maximumf %24, %23 : vector<16x32xf32>
    %26 = vector.broadcast %cst_9 : f32 to vector<16x32xf32>
    %27 = arith.minimumf %26, %25 : vector<16x32xf32>
    %c0_10 = arith.constant 0 : index
    %c0_11 = arith.constant 0 : index
    %28 = vector.load %arg3[%c0_10, %c0_11] : memref<32x64xi8, #tpu.memory_space<vmem>>, vector<32x64xi8>
    %29 = arith.sitofp %28 : vector<32x64xi8> to vector<32x64xf32>
    %cst_12 = arith.constant dense<0.000000e+00> : vector<16x64xf32>
    %30 = tpu.matmul %27, %29, %cst_12 {dimension_numbers = #tpu.dot_dimension_numbers<[1], [0], [0], [1], [0, 0, 1, 1], [], []>} : vector<16x32xf32>, vector<32x64xf32>, vector<16x64xf32> -> vector<16x64xf32>
    %31 = vector.broadcast %20 : vector<16x1xf32> to vector<16x64xf32>
    %32 = arith.mulf %30, %31 : vector<16x64xf32>
    %c0_13 = arith.constant 0 : index
    %c0_14 = arith.constant 0 : index
    %33 = vector.load %arg4[%c0_13, %c0_14] : memref<1x64xf32, #tpu.memory_space<vmem>>, vector<1x64xf32>
    %34 = vector.broadcast %33 : vector<1x64xf32> to vector<16x64xf32>
    %35 = arith.mulf %32, %34 : vector<16x64xf32>
    %36 = vector.extract_strided_slice %35 {offsets = [0, 0], sizes = [16, 32], strides = [1, 1]} : vector<16x64xf32> to vector<16x32xf32>
    %c0_15 = arith.constant 0 : index
    %c0_16 = arith.constant 0 : index
    %37 = vector.load %arg5[%c0_15, %c0_16] : memref<16x32xf32, #tpu.memory_space<vmem>>, vector<16x32xf32>
    tpu.vector_store %arg5[%c0_15, %c0_16], %36 {strides = array<i32>} : memref<16x32xf32, #tpu.memory_space<vmem>>, vector<16x32xf32>,
    %38 = vector.extract_strided_slice %35 {offsets = [0, 32], sizes = [16, 16], strides = [1, 1]} : vector<16x64xf32> to vector<16x16xf32>
    %c0_17 = arith.constant 0 : index
    %c0_18 = arith.constant 0 : index
    %39 = vector.load %arg6[%c0_17, %c0_18] : memref<16x16xf32, #tpu.memory_space<vmem>>, vector<16x16xf32>
    tpu.vector_store %arg6[%c0_17, %c0_18], %38 {strides = array<i32>} : memref<16x16xf32, #tpu.memory_space<vmem>>, vector<16x16xf32>,
    %40 = vector.extract_strided_slice %35 {offsets = [0, 48], sizes = [16, 16], strides = [1, 1]} : vector<16x64xf32> to vector<16x16xf32>
    %c0_19 = arith.constant 0 : index
    %c0_20 = arith.constant 0 : index
    %41 = vector.load %arg7[%c0_19, %c0_20] : memref<16x16xf32, #tpu.memory_space<vmem>>, vector<16x16xf32>
    tpu.vector_store %arg7[%c0_19, %c0_20], %40 {strides = array<i32>} : memref<16x16xf32, #tpu.memory_space<vmem>>, vector<16x16xf32>,
    return
  }
  func.func @transform_0(%arg0: i32) -> (i32, i32) {
    %c0_i32 = arith.constant 0 : i32
    %c0_i32_0 = arith.constant 0 : i32
    return %arg0, %c0_i32 : i32, i32
  }
  func.func @transform_1(%arg0: i32) -> (i32, i32) {
    %c0_i32 = arith.constant 0 : i32
    %c0_i32_0 = arith.constant 0 : i32
    %c0_i32_1 = arith.constant 0 : i32
    return %c0_i32, %c0_i32_0 : i32, i32
  }
  func.func @transform_2(%arg0: i32) -> (i32, i32) {
    %c0_i32 = arith.constant 0 : i32
    %c0_i32_0 = arith.constant 0 : i32
    %c0_i32_1 = arith.constant 0 : i32
    return %c0_i32, %c0_i32_0 : i32, i32
  }
  func.func @transform_3(%arg0: i32) -> (i32, i32) {
    %c0_i32 = arith.constant 0 : i32
    %c0_i32_0 = arith.constant 0 : i32
    %c0_i32_1 = arith.constant 0 : i32
    return %c0_i32, %c0_i32_0 : i32, i32
  }
  func.func @transform_4(%arg0: i32) -> (i32, i32) {
    %c0_i32 = arith.constant 0 : i32
    %c0_i32_0 = arith.constant 0 : i32
    return %arg0, %c0_i32 : i32, i32
  }
  func.func @transform_5(%arg0: i32) -> (i32, i32) {
    %c0_i32 = arith.constant 0 : i32
    %c0_i32_0 = arith.constant 0 : i32
    return %arg0, %c0_i32 : i32, i32
  }
  func.func @transform_6(%arg0: i32) -> (i32, i32) {
    %c0_i32 = arith.constant 0 : i32
    %c0_i32_0 = arith.constant 0 : i32
    return %arg0, %c0_i32 : i32, i32
  }
}

</mosaic_0001>

<bundles_post_ra>
// kernel: tpu_custom_call.1
= control target key start
LH: loop header
LB: loop body
LE: loop exit
PB: predicated region body
PF: predicated region fallthrough
CT: control target
= control target key end

     0   :  { %12 = vsyncpa [#allocation3], 0  ;;  %s517_s0 = inlined_call_operand.hbm [shape: f32[16,32], index: 0, kind: input, shape index: {}]   ;;  %s518_s1 = inlined_call_operand.vmem [shape: f32[1,32], index: 1, kind: input, shape index: {}]   ;;  %s519_s2 = inlined_call_operand.hbm [shape: s8[32,64], index: 2, kind: input, shape index: {}]   ;;  %s520_s3 = inlined_call_operand.vmem [shape: f32[1,64], index: 3, kind: input, shape index: {}]   ;;  %s521_s4 = inlined_call_operand.hbm [shape: f32[16,32], index: 4, kind: output, shape index: {0}]   ;;  %s522_s5 = inlined_call_operand.hbm [shape: f32[16,16], index: 5, kind: output, shape index: {1}]   ;;  %s523_s6 = inlined_call_operand.hbm [shape: f32[16,16], index: 6, kind: output, shape index: {2}]  }
   0x1   :  { %13 = vsyncpa [#allocation6], 0 }
   0x2   :  { %14 = vsyncpa [#allocation4], 0 }
   0x3   :  { %15 = vsyncpa [#allocation9], 0  ;;  %s382_s21 = smov [#allocation2]   ;;  %s264_s25 = scalar_lea.hbm %s517_s0, 256 }
   0x4   :  { %s21_s22 = sshll.u32 %s382_s21, 4  ;;  %p265_p0 = scmp.ne.s32.totalorder %s517_s0, %s264_s25  ;;  %s22_s22 = int_to_ptr.vmem [resolvable:$true] %s21_s22 }
   0x5   :  { %p268_p1 = scmp.lt.u32.totalorder %s264_s25, %s517_s0 }
   0x7   :  { %p270_p2 = pnand %p268_p1, %p265_p0 }
   0x9   :  { %273 = shalt.err (!%p270_p2)
}
   0xa   :  { %s274_s30 = scalar_lea.vmem %s22_s22, 256  ;;  %p279_p4 = scmp.lt.s32.totalorder %s22_s22, %s22_s22 }
   0xb   :  { %p275_p3 = scmp.ne.s32.totalorder %s22_s22, %s274_s30  ;;  %p280_p5 = scmp.lt.s32.totalorder %s274_s30, %s274_s30 }
   0xd   :  { %p281_p6 = por %p280_p5, %p279_p4 }
   0xf   :  { %p282_p7 = pnand %p281_p6, %p275_p3 }
  0x11   :  { %285 = shalt.err (!%p282_p7)
}
  0x12   :  { %s383_s7 = smov 128   ;;  %s384_s8 = smov 8  }
  0x13   :  { %27 = dma.hbm_to_vmem [thread:$0]  %s517_s0, 256, %s22_s22, [#allocation3], %s383_s7, %s383_s7, %s384_s8  }
  0x14   :  { %s385_s11 = smov [#allocation5]   ;;  %s286_s15 = scalar_lea.hbm %s519_s2, 128 }
  0x15   :  { %s36_s12 = sshll.u32 %s385_s11, 4  ;;  %p287_p8 = scmp.ne.s32.totalorder %s519_s2, %s286_s15  ;;  %s37_s12 = int_to_ptr.vmem [resolvable:$true] %s36_s12 }
  0x16   :  { %p290_p9 = scmp.lt.u32.totalorder %s286_s15, %s519_s2 }
  0x18   :  { %p292_p10 = pnand %p290_p9, %p287_p8 }
  0x1a   :  { %295 = shalt.err (!%p292_p10)
}
  0x1b   :  { %s296_s20 = scalar_lea.vmem %s37_s12, 128  ;;  %p301_p12 = scmp.lt.s32.totalorder %s37_s12, %s37_s12 }
  0x1c   :  { %p297_p11 = scmp.ne.s32.totalorder %s37_s12, %s296_s20  ;;  %p302_p13 = scmp.lt.s32.totalorder %s296_s20, %s296_s20 }
  0x1e   :  { %p303_p0 = por %p302_p13, %p301_p12 }
  0x20   :  { %p304_p1 = pnand %p303_p0, %p297_p11 }
  0x22   :  { %307 = shalt.err (!%p304_p1)
}
  0x23   :  { %39 = dma.hbm_to_vmem [thread:$0]  %s519_s2, 128, %s37_s12, [#allocation6]  }
  0x24   :  { %374 = dma.done.wait [#allocation3], 256  }
  0x25   :  { %375 = vsyncadd [#allocation3], 4294967040 }
  0x26   :  { %376 = dma.done.wait [#allocation6], 128  }
  0x27   :  { %377 = vsyncadd [#allocation6], 4294967168  ;;  %v49_v0 = vld [vmem:[#allocation2] sm:$0xff]  ;;  %vm54_vm0 = vcmask 261120   ;;  %v50_v1 = vld [vmem:[#allocation2 + $0x8] sm:$0xff]  ;;  %v386_v24 = vmov 0.0  }
  0x28   :  { %v52_v2 = vmul.f32 %v49_v0, %v49_v0  ;;  %v53_v3 = vmul.f32 %v50_v1, %v50_v1  ;;  %v229_v13 = vld [vmem:[%s518_s1] ss:$0 sm:$0xff]  ;;  %v100_v23 = vld [vmem:[#allocation5] sm:$0xff]  ;;  %235 = vmatprep.subr.bf16.mxu0 %v386_v24  ;;  %vm387_vm1 = vmmov 0   ;;  %s388_s24 = smov [#allocation7]   ;;  %s389_s26 = smov 80  }
  0x29   :  { %v102_v25 = vunpack.c.l.s8.bf16 %v100_v23  ;;  %239 = vmatprep.mubr.msk.bf16.mxu0 %vm387_vm1, %v386_v24  ;;  %v103_v26 = vunpack.c.h.s8.bf16 %v100_v23  ;;  %v231_v45 = vld [vmem:[%s520_s3] ss:$0 sm:$0xff]  ;;  %s185_s25 = sshll.u32 %s388_s24, 4  ;;  %s390_s27 = smov 96   ;;  %s186_s25 = int_to_ptr.vmem [resolvable:$true] %s185_s25 }
  0x2a   :  { %v55_v4 = vsel %vm54_vm0, %v52_v2, 0.0  ;;  %v58_v5 = vsel %vm54_vm0, %v53_v3, 0.0  ;;  %s308_s28 = scalar_lea.vmem %s186_s25, 256  ;;  %p313_p3 = scmp.lt.s32.totalorder %s186_s25, %s186_s25 }
  0x2b   :  { %56 = vadd.xlane.f32.xlu0 %v55_v4  ;;  %236 = vmatpush3.bf16.msra.mxu0 %v102_v25  ;;  %p309_p2 = scmp.ne.s32.totalorder %s186_s25, %s308_s28  ;;  %p314_p4 = scmp.lt.s32.totalorder %s308_s28, %s308_s28 }
  0x2c   :  { %237 = vmatprep.subr.bf16.mxu0 %v386_v24 }
  0x2d   :  { %p315_p5 = por %p314_p4, %p313_p3 }
  0x2f   :  { %59 = vadd.xlane.f32.xlu0 %v58_v5  ;;  %238 = vmatpush3.bf16.msra.mxu0 %v103_v26  ;;  %p316_p6 = pnand %p315_p5, %p309_p2 }
  0xb8   :  { %v57_v6 = vpop.xlane.xlu0 %56 }
  0xb9   :  { %v62_v7 = vmul.f32 0.03125, %v57_v6 }
  0xbb   :  { %v64_v8 = vadd.f32 1e-06, %v62_v7 }
  0xbc   :  { %v60_v9 = vpop.xlane.xlu0 %59 }
  0xbd   :  { %256 = vrsqrt.f32 %v64_v8  ;;  %v63_v10 = vmul.f32 0.03125, %v60_v9 }
  0xbf   :  { %v65_v11 = vadd.f32 1e-06, %v63_v10 }
  0xc1   :  { %258 = vrsqrt.f32 %v65_v11 }
  0xc7   :  { %v257_v12 = vpop.eup %256 }
  0xc8   :  { %v68_v14 = vmul.f32 %v257_v12, %v49_v0 }
  0xca   :  { %v76_v15 = vmul.f32 %v229_v13, %v68_v14 }
  0xcb   :  { %v259_v16 = vpop.eup %258 }
  0xcc   :  { %v78_v17 = vand.u32 2147483647, %v76_v15  ;;  %v69_v18 = vmul.f32 %v259_v16, %v50_v1 }
  0xce   :  { %v80_v19 = vsel %vm54_vm0, %v78_v17, -inf  ;;  %v77_v20 = vmul.f32 %v229_v13, %v69_v18 }
  0xcf   :  { %81 = vmax.xlane.f32.xlu1 %v80_v19 }
  0xd0   :  { %v79_v21 = vand.u32 2147483647, %v77_v20 }
  0xd2   :  { %v83_v22 = vsel %vm54_vm0, %v79_v21, -inf }
  0xd3   :  { %84 = vmax.xlane.f32.xlu1 %v83_v22 }
 0x15c   :  { %v82_v27 = vpop.xlane.xlu1 %81 }
 0x15d   :  { %v86_v28 = vmax.f32 %v82_v27, 1e-08 }
 0x15f   :  { %v88_v29 = vmul.f32 0.007874016, %v86_v28 }
 0x160   :  { %v85_v30 = vpop.xlane.xlu1 %84 }
 0x161   :  { %260 = vrcp.f32 %v88_v29  ;;  %v87_v31 = vmax.f32 %v85_v30, 1e-08 }
 0x163   :  { %v89_v32 = vmul.f32 0.007874016, %v87_v31 }
 0x165   :  { %262 = vrcp.f32 %v89_v32 }
 0x16b   :  { %v261_v33 = vpop.eup %260 }
 0x16c   :  { %v91_v34 = vmul.f32 %v261_v33, %v76_v15 }
 0x16e   :  { %v243_v35 = vround.rtne.f32 %v91_v34 }
 0x16f   :  { %v263_v36 = vpop.eup %262 }
 0x170   :  { %v93_v37 = vmul.f32 %v263_v36, %v77_v20  ;;  %v96_v39 = vmax.f32 %v243_v35, -128.0 }
 0x172   :  { %v244_v38 = vround.rtne.f32 %v93_v37  ;;  %v98_v41 = vmin.f32 %v96_v39, 127.0 }
 0x174   :  { %v97_v40 = vmax.f32 %v244_v38, -128.0 }
 0x176   :  { %v99_v42 = vmin.f32 %v97_v40, 127.0 }
 0x178   :  { %v101_v43 = vpack.c.bf16 %v99_v42, %v98_v41 }
 0x17a   :  { %240 = vmatmul.mubr.msk.bf16.vlgmr.msra.gmra.mrb[0].mxu0 %vm54_vm0, %v101_v43 }
 0x24d   :  { %v141_v44 = vpop.f32.mrb[0].mxu0 }
 0x24e   :  { %v148_v46 = vmul.f32 %v141_v44, %v88_v29  ;;  %v241_v47 = vpop.f32.mrb[1].mxu0 }
 0x24f   :  { %v144_v48 = vpop.f32.mrb[2].mxu0 }
 0x250   :  { %v157_v49 = vmul.f32 %v231_v45, %v148_v46  ;;  %v149_v50 = vmul.f32 %v144_v48, %v89_v32  ;;  %v242_v51 = vpop.f32.mrb[3].mxu0 }
 0x252   :  { %159 = vst.msk [vmem:[#allocation7] sm:$0xff] %vm54_vm0, %v157_v49  ;;  %v158_v52 = vmul.f32 %v231_v45, %v149_v50  ;;  %172 = vrot.lane.b32.xlu1 %v157_v49, %s389_s26  ;;  %163 = vrot.lane.b32.xlu0 %v157_v49, %s390_s27 }
 0x254   :  { %160 = vst.msk [vmem:[#allocation7 + $0x8] sm:$0xff] %vm54_vm0, %v158_v52 }
 0x255   :  { %319 = shalt.err (!%p316_p6)
}
 0x256   :  { %s320_s30 = scalar_lea.hbm %s521_s4, 256 }
 0x257   :  { %p321_p7 = scmp.ne.s32.totalorder %s521_s4, %s320_s30  ;;  %p324_p8 = scmp.lt.u32.totalorder %s320_s30, %s521_s4 }
 0x259   :  { %p326_p9 = pnand %p324_p8, %p321_p7 }
 0x25b   :  { %329 = shalt.err (!%p326_p9)
}
 0x25c   :  { %191 = dma.vmem_to_hbm [thread:$0]  %s186_s25, 256, %s521_s4, [#allocation4], %s383_s7, %s383_s7, %s384_s8   ;;  %vm169_vm2 = vcmask 130048  }
 0x25d   :  { %165 = vrot.lane.b32.xlu1 %v158_v52, %s390_s27  ;;  %s391_s15 = smov [#allocation8]   ;;  %s392_s17 = smov [#allocation10]  }
 0x25e   :  { %s197_s16 = sshll.u32 %s391_s15, 4  ;;  %s209_s18 = sshll.u32 %s392_s17, 4  ;;  %s198_s16 = int_to_ptr.vmem [resolvable:$true] %s197_s16  ;;  %s210_s18 = int_to_ptr.vmem [resolvable:$true] %s209_s18 }
 0x25f   :  { %s330_s19 = scalar_lea.vmem %s198_s16, 256  ;;  %p335_p11 = scmp.lt.s32.totalorder %s198_s16, %s198_s16 }
 0x260   :  { %p331_p10 = scmp.ne.s32.totalorder %s198_s16, %s330_s19  ;;  %p336_p12 = scmp.lt.s32.totalorder %s330_s19, %s330_s19 }
 0x261   :  { %174 = vrot.lane.b32.xlu1 %v158_v52, %s389_s26 }
 0x262   :  { %p337_p13 = por %p336_p12, %p335_p11 }
 0x264   :  { %p338_p0 = pnand %p337_p13, %p331_p10 }
 0x2c4   :  { %v173_v53 = vpop.permute.xlu1 %172  ;;  %v164_v54 = vpop.permute.xlu0 %163 }
 0x2c5   :  { %178 = vst.msk [vmem:[#allocation10] sm:$0xff] %vm169_vm2, %v173_v53  ;;  %170 = vst.msk [vmem:[#allocation8] sm:$0xff] %vm169_vm2, %v164_v54 }
 0x2cf   :  { %v166_v55 = vpop.permute.xlu1 %165 }
 0x2d0   :  { %171 = vst.msk [vmem:[#allocation8 + $0x8] sm:$0xff] %vm169_vm2, %v166_v55 }
 0x2d1   :  { %341 = shalt.err (!%p338_p0)
}
 0x2d2   :  { %s342_s0 = scalar_lea.hbm %s522_s5, 256 }
 0x2d3   :  { %p343_p1 = scmp.ne.s32.totalorder %s522_s5, %s342_s0  ;;  %p346_p2 = scmp.lt.u32.totalorder %s342_s0, %s522_s5 }
 0x2d5   :  { %p348_p3 = pnand %p346_p2, %p343_p1 }
 0x2d7   :  { %351 = shalt.err (!%p348_p3)
}
 0x2d8   :  { %203 = dma.vmem_to_hbm [thread:$0]  %s198_s16, 256, %s522_s5, [#allocation9], %s383_s7, %s383_s7, %s384_s8   ;;  %v175_v56 = vpop.permute.xlu1 %174 }
 0x2d9   :  { %179 = vst.msk [vmem:[#allocation10 + $0x8] sm:$0xff] %vm169_vm2, %v175_v56  ;;  %s352_s25 = scalar_lea.vmem %s210_s18, 256  ;;  %p357_p5 = scmp.lt.s32.totalorder %s210_s18, %s210_s18 }
 0x2da   :  { %p353_p4 = scmp.ne.s32.totalorder %s210_s18, %s352_s25  ;;  %p358_p6 = scmp.lt.s32.totalorder %s352_s25, %s352_s25 }
 0x2dc   :  { %p359_p7 = por %p358_p6, %p357_p5 }
 0x2de   :  { %p360_p8 = pnand %p359_p7, %p353_p4 }
 0x2e0   :  { %363 = shalt.err (!%p360_p8)
}
 0x2e1   :  { %s364_s28 = scalar_lea.hbm %s523_s6, 256 }
 0x2e2   :  { %p365_p9 = scmp.ne.s32.totalorder %s523_s6, %s364_s28  ;;  %p368_p10 = scmp.lt.u32.totalorder %s364_s28, %s523_s6 }
 0x2e4   :  { %p370_p11 = pnand %p368_p10, %p365_p9 }
 0x2e6   :  { %373 = shalt.err (!%p370_p11)
}
 0x2e7   :  { %215 = dma.vmem_to_hbm [thread:$0]  %s210_s18, 256, %s523_s6, [#allocation9], %s383_s7, %s383_s7, %s384_s8  }
 0x2e8   :  { %378 = dma.done.wait [#allocation4], 256  }
 0x2e9   :  { %379 = vsyncadd [#allocation4], 4294967040 }
 0x2ea   :  { %380 = dma.done.wait [#allocation9], 512  }
 0x2eb   :  { %381 = vsyncadd [#allocation9], 4294966784 }
 0x2ec   :  { %225 = vsyncpa [#allocation3], 1 }
 0x2ed   :  { %226 = vsyncpa [#allocation6], 1 }
 0x2ee   :  { %227 = vsyncpa [#allocation4], 1 }
 0x2ef   :  { %228 = vsyncpa [#allocation9], 1 }

// kernel: tpu_custom_call.1
= control target key start
LH: loop header
LB: loop body
LE: loop exit
PB: predicated region body
PF: predicated region fallthrough
CT: control target
= control target key end

     0   :  { %12 = vsyncpa [#allocation3], 0  ;;  %s570_s0 = inlined_call_operand.hbm [shape: f32[16,32], index: 0, kind: input, shape index: {}]   ;;  %s571_s1 = inlined_call_operand.vmem [shape: f32[1,32], index: 1, kind: input, shape index: {}]   ;;  %s572_s2 = inlined_call_operand.hbm [shape: s8[32,64], index: 2, kind: input, shape index: {}]   ;;  %s573_s3 = inlined_call_operand.vmem [shape: f32[1,64], index: 3, kind: input, shape index: {}]   ;;  %s574_s4 = inlined_call_operand.hbm [shape: f32[16,32], index: 4, kind: output, shape index: {0}]   ;;  %s575_s5 = inlined_call_operand.hbm [shape: f32[16,16], index: 5, kind: output, shape index: {1}]   ;;  %s576_s6 = inlined_call_operand.hbm [shape: f32[16,16], index: 6, kind: output, shape index: {2}]  }
   0x1   :  { %13 = vsyncpa [#allocation6], 0 }
   0x2   :  { %14 = vsyncpa [#allocation4], 0 }
   0x3   :  { %15 = vsyncpa [#allocation9], 0  ;;  %s436_s21 = smov [#allocation2]   ;;  %s318_s25 = scalar_lea.hbm %s570_s0, 256 }
   0x4   :  { %s21_s22 = sshll.u32 %s436_s21, 4  ;;  %p319_p0 = scmp.ne.s32.totalorder %s570_s0, %s318_s25  ;;  %s22_s22 = int_to_ptr.vmem [resolvable:$true] %s21_s22 }
   0x5   :  { %p322_p1 = scmp.lt.u32.totalorder %s318_s25, %s570_s0 }
   0x7   :  { %p324_p2 = pnand %p322_p1, %p319_p0 }
   0x9   :  { %327 = shalt.err (!%p324_p2)
}
   0xa   :  { %s328_s30 = scalar_lea.vmem %s22_s22, 256  ;;  %p333_p4 = scmp.lt.s32.totalorder %s22_s22, %s22_s22 }
   0xb   :  { %p329_p3 = scmp.ne.s32.totalorder %s22_s22, %s328_s30  ;;  %p334_p5 = scmp.lt.s32.totalorder %s328_s30, %s328_s30 }
   0xd   :  { %p335_p6 = por %p334_p5, %p333_p4 }
   0xf   :  { %p336_p7 = pnand %p335_p6, %p329_p3 }
  0x11   :  { %339 = shalt.err (!%p336_p7)
}
  0x12   :  { %s437_s7 = smov 128   ;;  %s438_s8 = smov 8  }
  0x13   :  { %27 = dma.hbm_to_vmem [thread:$0]  %s570_s0, 256, %s22_s22, [#allocation3], %s437_s7, %s437_s7, %s438_s8  }
  0x14   :  { %s439_s11 = smov [#allocation5]   ;;  %s340_s15 = scalar_lea.hbm %s572_s2, 128 }
  0x15   :  { %s36_s12 = sshll.u32 %s439_s11, 4  ;;  %p341_p8 = scmp.ne.s32.totalorder %s572_s2, %s340_s15  ;;  %s37_s12 = int_to_ptr.vmem [resolvable:$true] %s36_s12 }
  0x16   :  { %p344_p9 = scmp.lt.u32.totalorder %s340_s15, %s572_s2 }
  0x18   :  { %p346_p10 = pnand %p344_p9, %p341_p8 }
  0x1a   :  { %349 = shalt.err (!%p346_p10)
}
  0x1b   :  { %s350_s20 = scalar_lea.vmem %s37_s12, 128  ;;  %p355_p12 = scmp.lt.s32.totalorder %s37_s12, %s37_s12 }
  0x1c   :  { %p351_p11 = scmp.ne.s32.totalorder %s37_s12, %s350_s20  ;;  %p356_p13 = scmp.lt.s32.totalorder %s350_s20, %s350_s20 }
  0x1e   :  { %p357_p0 = por %p356_p13, %p355_p12 }
  0x20   :  { %p358_p1 = pnand %p357_p0, %p351_p11 }
  0x22   :  { %361 = shalt.err (!%p358_p1)
}
  0x23   :  { %39 = dma.hbm_to_vmem [thread:$0]  %s572_s2, 128, %s37_s12, [#allocation6]  }
  0x24   :  { %428 = dma.done.wait [#allocation3], 256  }
  0x25   :  { %429 = vsyncadd [#allocation3], 4294967040 }
  0x26   :  { %430 = dma.done.wait [#allocation6], 128  }
  0x27   :  { %431 = vsyncadd [#allocation6], 4294967168  ;;  %v48_v0 = vld [vmem:[#allocation2] sm:$0xff]  ;;  %vm53_vm0 = vcmask 261120   ;;  %v49_v1 = vld [vmem:[#allocation2 + $0x8] sm:$0xff]  ;;  %s440_s24 = smov [#allocation7]  }
  0x28   :  { %v51_v2 = vmul.f32 %v48_v0, %v48_v0  ;;  %v52_v3 = vmul.f32 %v49_v1, %v49_v1  ;;  %v270_v13 = vld [vmem:[%s571_s1] ss:$0 sm:$0xff]  ;;  %v99_v23 = vld [vmem:[#allocation5] sm:$0xff]  ;;  %s226_s25 = sshll.u32 %s440_s24, 4  ;;  %s441_s26 = smov 96   ;;  %s227_s25 = int_to_ptr.vmem [resolvable:$true] %s226_s25 }
  0x29   :  { %v291_v24 = vunpack.c.l.s8.bf16 %v99_v23  ;;  %v295_v25 = vunpack.c.h.s8.bf16 %v99_v23  ;;  %v273_v43 = vld [vmem:[%s573_s3] ss:$0 sm:$0xff]  ;;  %s362_s27 = scalar_lea.vmem %s227_s25, 256  ;;  %p367_p3 = scmp.lt.s32.totalorder %s227_s25, %s227_s25 }
  0x2a   :  { %v54_v4 = vsel %vm53_vm0, %v51_v2, 0.0  ;;  %v57_v5 = vsel %vm53_vm0, %v52_v3, 0.0  ;;  %p363_p2 = scmp.ne.s32.totalorder %s227_s25, %s362_s27  ;;  %p368_p4 = scmp.lt.s32.totalorder %s362_s27, %s362_s27 }
  0x2b   :  { %55 = vadd.xlane.f32.xlu0 %v54_v4  ;;  %292 = vmatprep.subr.bf16.mxu0 %v291_v24 }
  0x2c   :  { %294 = vmatpush3.bf16.msra.mxu0 %v291_v24  ;;  %p369_p5 = por %p368_p4, %p367_p3 }
  0x2d   :  { %296 = vmatprep.subr.bf16.mxu0 %v295_v25 }
  0x2e   :  { %p370_p6 = pnand %p369_p5, %p363_p2 }
  0x2f   :  { %58 = vadd.xlane.f32.xlu0 %v57_v5 }
  0x30   :  { %298 = vmatpush3.bf16.msra.mxu0 %v295_v25 }
  0xb8   :  { %v56_v6 = vpop.xlane.xlu0 %55 }
  0xb9   :  { %v61_v7 = vmul.f32 0.03125, %v56_v6 }
  0xbb   :  { %v63_v8 = vadd.f32 1e-06, %v61_v7 }
  0xbc   :  { %v59_v9 = vpop.xlane.xlu0 %58 }
  0xbd   :  { %310 = vrsqrt.f32 %v63_v8  ;;  %v62_v10 = vmul.f32 0.03125, %v59_v9 }
  0xbf   :  { %v64_v11 = vadd.f32 1e-06, %v62_v10 }
  0xc1   :  { %312 = vrsqrt.f32 %v64_v11 }
  0xc7   :  { %v311_v12 = vpop.eup %310 }
  0xc8   :  { %v67_v14 = vmul.f32 %v311_v12, %v48_v0 }
  0xca   :  { %v75_v15 = vmul.f32 %v270_v13, %v67_v14 }
  0xcb   :  { %v313_v16 = vpop.eup %312 }
  0xcc   :  { %v77_v17 = vand.u32 2147483647, %v75_v15  ;;  %v68_v18 = vmul.f32 %v313_v16, %v49_v1 }
  0xce   :  { %v79_v19 = vsel %vm53_vm0, %v77_v17, -inf  ;;  %v76_v20 = vmul.f32 %v270_v13, %v68_v18 }
  0xcf   :  { %80 = vmax.xlane.f32.xlu1 %v79_v19 }
  0xd0   :  { %v78_v21 = vand.u32 2147483647, %v76_v20 }
  0xd2   :  { %v82_v22 = vsel %vm53_vm0, %v78_v21, -inf }
  0xd3   :  { %83 = vmax.xlane.f32.xlu1 %v82_v22 }
 0x15c   :  { %v81_v26 = vpop.xlane.xlu1 %80 }
 0x15d   :  { %v85_v27 = vmax.f32 %v81_v26, 1e-08 }
 0x15f   :  { %v87_v28 = vmul.f32 0.007874016, %v85_v27 }
 0x160   :  { %v84_v29 = vpop.xlane.xlu1 %83 }
 0x161   :  { %314 = vrcp.f32 %v87_v28  ;;  %v86_v30 = vmax.f32 %v84_v29, 1e-08 }
 0x163   :  { %v88_v31 = vmul.f32 0.007874016, %v86_v30 }
 0x165   :  { %316 = vrcp.f32 %v88_v31 }
 0x16b   :  { %v315_v32 = vpop.eup %314 }
 0x16c   :  { %v90_v33 = vmul.f32 %v315_v32, %v75_v15 }
 0x16e   :  { %v299_v34 = vround.rtne.f32 %v90_v33 }
 0x16f   :  { %v317_v35 = vpop.eup %316 }
 0x170   :  { %v95_v36 = vmax.f32 %v299_v34, -128.0  ;;  %v92_v37 = vmul.f32 %v317_v35, %v76_v20 }
 0x172   :  { %v97_v38 = vmin.f32 %v95_v36, 127.0  ;;  %v300_v39 = vround.rtne.f32 %v92_v37 }
 0x174   :  { %288 = vmatprep.mubr.msk.f32.mxu0 %vm53_vm0, %v97_v38  ;;  %v96_v40 = vmax.f32 %v300_v39, -128.0 }
 0x176   :  { %v98_v41 = vmin.f32 %v96_v40, 127.0 }
 0x178   :  { %289 = vmatmul.mubr.msk.f32.vlgmr.msra.gmra.mrb[0].mxu0 %vm53_vm0, %v98_v41 }
 0x24b   :  { %v290_v42 = vpop.f32.mrb[0].mxu0 }
 0x24c   :  { %v190_v44 = vmul.f32 %v290_v42, %v88_v31  ;;  %v180_v45 = vpop.f32.mrb[1].mxu0 }
 0x24d   :  { %v189_v46 = vmul.f32 %v180_v45, %v87_v28 }
 0x24e   :  { %v199_v47 = vmul.f32 %v273_v43, %v190_v44 }
 0x24f   :  { %v198_v48 = vmul.f32 %v273_v43, %v189_v46 }
 0x250   :  { %201 = vst.msk [vmem:[#allocation7 + $0x8] sm:$0xff] %vm53_vm0, %v199_v47  ;;  %206 = vrot.lane.b32.xlu1 %v199_v47, %s441_s26 }
 0x251   :  { %200 = vst.msk [vmem:[#allocation7] sm:$0xff] %vm53_vm0, %v198_v48  ;;  %204 = vrot.lane.b32.xlu0 %v198_v48, %s441_s26 }
 0x252   :  { %373 = shalt.err (!%p370_p6)
}
 0x253   :  { %s374_s29 = scalar_lea.hbm %s574_s4, 256 }
 0x254   :  { %p375_p7 = scmp.ne.s32.totalorder %s574_s4, %s374_s29  ;;  %p378_p8 = scmp.lt.u32.totalorder %s374_s29, %s574_s4 }
 0x256   :  { %p380_p9 = pnand %p378_p8, %p375_p7 }
 0x258   :  { %383 = shalt.err (!%p380_p9)
}
 0x259   :  { %232 = dma.vmem_to_hbm [thread:$0]  %s227_s25, 256, %s574_s4, [#allocation4], %s437_s7, %s437_s7, %s438_s8   ;;  %vm210_vm1 = vcmask 130048  }
 0x25a   :  { %s442_s14 = smov 80   ;;  %s443_s15 = smov [#allocation8]  }
 0x25b   :  { %213 = vrot.lane.b32.xlu1 %v198_v48, %s442_s14  ;;  %s238_s16 = sshll.u32 %s443_s15, 4  ;;  %s239_s16 = int_to_ptr.vmem [resolvable:$true] %s238_s16 }
 0x25c   :  { %s384_s17 = scalar_lea.vmem %s239_s16, 256  ;;  %p389_p11 = scmp.lt.s32.totalorder %s239_s16, %s239_s16 }
 0x25d   :  { %p385_p10 = scmp.ne.s32.totalorder %s239_s16, %s384_s17  ;;  %p390_p12 = scmp.lt.s32.totalorder %s384_s17, %s384_s17 }
 0x25f   :  { %215 = vrot.lane.b32.xlu1 %v199_v47, %s442_s14  ;;  %p391_p13 = por %p390_p12, %p389_p11 }
 0x261   :  { %p392_p0 = pnand %p391_p13, %p385_p10 }
 0x2c2   :  { %v207_v49 = vpop.permute.xlu1 %206 }
 0x2c3   :  { %212 = vst.msk [vmem:[#allocation8 + $0x8] sm:$0xff] %vm210_vm1, %v207_v49  ;;  %v205_v50 = vpop.permute.xlu0 %204 }
 0x2c4   :  { %211 = vst.msk [vmem:[#allocation8] sm:$0xff] %vm210_vm1, %v205_v50 }
 0x2c5   :  { %395 = shalt.err (!%p392_p0)
}
 0x2c6   :  { %s396_s19 = scalar_lea.hbm %s575_s5, 256 }
 0x2c7   :  { %p397_p1 = scmp.ne.s32.totalorder %s575_s5, %s396_s19  ;;  %p400_p2 = scmp.lt.u32.totalorder %s396_s19, %s575_s5 }
 0x2c9   :  { %p402_p3 = pnand %p400_p2, %p397_p1 }
 0x2cb   :  { %405 = shalt.err (!%p402_p3)
}
 0x2cc   :  { %244 = dma.vmem_to_hbm [thread:$0]  %s239_s16, 256, %s575_s5, [#allocation9], %s437_s7, %s437_s7, %s438_s8  }
 0x2cd   :  { %v214_v51 = vpop.permute.xlu1 %213  ;;  %s444_s23 = smov [#allocation10]  }
 0x2ce   :  { %s250_s24 = sshll.u32 %s444_s23, 4  ;;  %219 = vst.msk [vmem:[#allocation10] sm:$0xff] %vm210_vm1, %v214_v51  ;;  %s251_s24 = int_to_ptr.vmem [resolvable:$true] %s250_s24 }
 0x2cf   :  { %s406_s25 = scalar_lea.vmem %s251_s24, 256  ;;  %p411_p5 = scmp.lt.s32.totalorder %s251_s24, %s251_s24 }
 0x2d0   :  { %p407_p4 = scmp.ne.s32.totalorder %s251_s24, %s406_s25  ;;  %p412_p6 = scmp.lt.s32.totalorder %s406_s25, %s406_s25 }
 0x2d1   :  { %v216_v52 = vpop.permute.xlu1 %215 }
 0x2d2   :  { %220 = vst.msk [vmem:[#allocation10 + $0x8] sm:$0xff] %vm210_vm1, %v216_v52  ;;  %p413_p7 = por %p412_p6, %p411_p5 }
 0x2d4   :  { %p414_p8 = pnand %p413_p7, %p407_p4 }
 0x2d6   :  { %417 = shalt.err (!%p414_p8)
}
 0x2d7   :  { %s418_s5 = scalar_lea.hbm %s576_s6, 256 }
 0x2d8   :  { %p419_p9 = scmp.ne.s32.totalorder %s576_s6, %s418_s5  ;;  %p422_p10 = scmp.lt.u32.totalorder %s418_s5, %s576_s6 }
 0x2da   :  { %p424_p11 = pnand %p422_p10, %p419_p9 }
 0x2dc   :  { %427 = shalt.err (!%p424_p11)
}
 0x2dd   :  { %256 = dma.vmem_to_hbm [thread:$0]  %s251_s24, 256, %s576_s6, [#allocation9], %s437_s7, %s437_s7, %s438_s8  }
 0x2de   :  { %432 = dma.done.wait [#allocation4], 256  }
 0x2df   :  { %433 = vsyncadd [#allocation4], 4294967040 }
 0x2e0   :  { %434 = dma.done.wait [#allocation9], 512  }
 0x2e1   :  { %435 = vsyncadd [#allocation9], 4294966784 }
 0x2e2   :  { %266 = vsyncpa [#allocation3], 1 }
 0x2e3   :  { %267 = vsyncpa [#allocation6], 1 }
 0x2e4   :  { %268 = vsyncpa [#allocation4], 1 }
 0x2e5   :  { %269 = vsyncpa [#allocation9], 1 }

</bundles_post_ra>
